<compile_context>
chip_gen: v6e
topology: v6e:2x2x1
jax: 0.10.0
libtpu: 0.0.40
codegen_flags: <defaults>
</compile_context>

<pallas_src>
import functools
import math

import jax
import jax.numpy as jnp
import numpy as np
from jax.experimental import pallas as pl
from jax.experimental.pallas import tpu as pltpu


# ----------------------------------------------------------------------------
# Kernel 1: projection + attention-vector scores (computed once per node).
# ----------------------------------------------------------------------------
def gat_project_kernel(x_ref, wt_ref, b_ref, alr_ref, h_ref, f_ref):
    """h = x @ W^T + b ;  f = h @ [a_l_blkdiag | a_r_blkdiag]   (all heads at once).

    x_ref  : [1, tile_n, c_in]
    wt_ref : [c_in, H*C]   (W pre-transposed)
    b_ref  : [1, H*C]
    alr_ref: [H*C, 2H]     block-diagonal packed [a_l | a_r]
    h_ref  : [1, tile_n, H*C]   output (projected features)
    f_ref  : [1, tile_n, 2H]    output (f_l in cols [:H], f_r in cols [H:])
    """
    h = jnp.dot(x_ref[0], wt_ref[...], preferred_element_type=jnp.float32) + b_ref[...]
    h_ref[0] = h
    f_ref[0] = jnp.dot(h, alr_ref[...], preferred_element_type=jnp.float32)


# ----------------------------------------------------------------------------
# Kernel 2: masked attention softmax + aggregation over one (batch, row-tile).
# ----------------------------------------------------------------------------
def gat_attn_kernel(f_l_ref, f_rt_ref, adj_ref, h_ref, out_ref, *,
                    num_heads, c_per_head, alpha):
    """f_l_ref : [1, tile_n, H]   query-side scores for this row tile
    f_rt_ref: [1, H, N]         key-side scores, pre-transposed (no in-loop XLU transpose)
    adj_ref : [1, tile_n, N]    int8 adjacency rows (1 == edge, incl. self loops)
    h_ref   : [1, N, H*C]       projected features of ALL nodes (values)
    out_ref : [1, tile_n, H*C]  concatenated per-head outputs (lane-dense store)
    """
    H, C = num_heads, c_per_head

    f_l = f_l_ref[0]                      # [tile_n, H]
    f_rt = f_rt_ref[0]                    # [H, N]
    h_all = h_ref[0]                      # [N, H*C]

    # Edge mask hoisted out of the head loop (one VPU compare for all H heads).
    mask = adj_ref[0] > 0                 # [tile_n, N] bool
    neg_fill = jnp.float32(-9e15)         # matches the PyTorch masked-fill value

    head_outs = []
    for hd in range(H):                   # H is small & static
        # logits[i, j] = leakyrelu( a_l . h_i + a_r . h_j )
        logits = f_l[:, hd:hd + 1] + f_rt[hd:hd + 1, :]          # [tile_n, N]
        logits = jnp.maximum(logits, alpha * logits)             # LeakyReLU
        logits = jnp.where(mask, logits, neg_fill)               # mask non-edges

        m = jnp.max(logits, axis=-1, keepdims=True)
        e = jnp.exp(logits - m)
        inv = 1.0 / jnp.sum(e, axis=-1, keepdims=True)           # [tile_n, 1]

        # Aggregate unnormalized, normalize afterwards ([tile_n,C] mul, not [tile_n,N] div).
        h_head = h_all[:, hd * C:(hd + 1) * C]                   # [N, C]
        out_h = jnp.dot(e, h_head, preferred_element_type=jnp.float32) * inv
        head_outs.append(out_h)

    # Single lane-dense full-width store (no per-head masked slice stores).
    out_ref[0] = head_outs[0] if H == 1 else jnp.concatenate(head_outs, axis=-1)


# ----------------------------------------------------------------------------
# Wrapper
# ----------------------------------------------------------------------------
def _vmem_capacity_bytes():
    try:
        cap = getattr(pltpu.get_tpu_info(), "vmem_capacity_bytes", None)
        if cap:
            return int(cap)
    except Exception:
        pass
    return 64 * 1024 * 1024  # conservative default (v7x per-TC VMEM)


def _pick_tile_n(N, H, HC, vmem_cap_bytes):
    """Generation-aware row tile: largest tile whose working set fits the VMEM budget."""
    if N <= 128:
        return N
    budget = int(vmem_cap_bytes * 0.6)        # headroom for double buffers / spills
    resident = N * HC * 4 + H * N * 4         # h_all + f_r_t, resident per grid step
    for t in (1024, 512, 256, 128):
        if N % t:
            continue
        per_tile = (2 * t * N * 1             # adj int8 tile, double-buffered
                    + 3 * t * N * 4           # logits / e / mask temporaries
                    + 2 * t * (HC + H) * 4)   # out + f_l tiles, double-buffered
        if resident + per_tile <= budget:
            return t
    for t in (128, 256, 512, 1024):
        if N % t == 0:
            return t
    return N  # TODO(synk): flash-style neighbor-axis tiling for non-divisible / huge N


def gat_layer(node_feats, adj_matrix, w, bias, a, *, num_heads,
              concat_heads=True, alpha=0.2, tile_n=None):
    """node_feats [B,N,c_in], adj_matrix [B,N,N], w [H*C,c_in], bias [H*C], a [H,2C]."""
    node_feats = jnp.asarray(node_feats, jnp.float32)
    w = jnp.asarray(w, jnp.float32)
    bias = jnp.asarray(bias, jnp.float32)
    a = jnp.asarray(a, jnp.float32)
    # int8 adjacency: exactly `adj == 1` (PyTorch masked-scatter semantics), 4x less HBM.
    adj_mask = (jnp.asarray(adj_matrix) == 1).astype(jnp.int8)

    B, N, c_in = node_feats.shape
    HC = w.shape[0]
    assert HC % num_heads == 0
    H = num_heads
    C = HC // H

    cap = _vmem_capacity_bytes()
    if tile_n is None:
        tile_n = _pick_tile_n(N, H, HC, cap)
    assert N % tile_n == 0, "node count must be a multiple of the row tile"
    assert tile_n == N or tile_n % 8 == 0
    n_tiles = N // tile_n
    vmem_limit = max(32 * 1024 * 1024, min(int(0.75 * cap), 110 * 1024 * 1024))

    # Host-side packing (done once, outside the kernels).
    wt = w.T                                   # [c_in, H*C]
    bias2 = bias.reshape(1, HC)
    a_l, a_r = a[:, :C], a[:, C:]
    eye = jnp.eye(H, dtype=jnp.float32)
    a_l_mat = (a_l[:, :, None] * eye[:, None, :]).reshape(HC, H)   # block-diag [H*C, H]
    a_r_mat = (a_r[:, :, None] * eye[:, None, :]).reshape(HC, H)
    a_lr = jnp.concatenate([a_l_mat, a_r_mat], axis=1)             # [H*C, 2H]

    cparams = pltpu.CompilerParams(
        dimension_semantics=("parallel", "parallel"),
        vmem_limit_bytes=vmem_limit)

    # ---- Stage 1: projection (per-node work done once, NOT once per row tile) ----
    h_nodes, f = pl.pallas_call(
        gat_project_kernel,
        out_shape=(jax.ShapeDtypeStruct((B, N, HC), jnp.float32),
                   jax.ShapeDtypeStruct((B, N, 2 * H), jnp.float32)),
        grid_spec=pltpu.PrefetchScalarGridSpec(
            num_scalar_prefetch=0,
            grid=(B, n_tiles),
            in_specs=[
                pl.BlockSpec((1, tile_n, c_in), lambda b, r: (b, r, 0)),
                pl.BlockSpec((c_in, HC), lambda b, r: (0, 0)),
                pl.BlockSpec((1, HC), lambda b, r: (0, 0)),
                pl.BlockSpec((HC, 2 * H), lambda b, r: (0, 0)),
            ],
            out_specs=[
                pl.BlockSpec((1, tile_n, HC), lambda b, r: (b, r, 0)),
                pl.BlockSpec((1, tile_n, 2 * H), lambda b, r: (b, r, 0)),
            ]),
        compiler_params=cparams,
    )(node_feats, wt, bias2, a_lr)

    f_l = f[:, :, :H]                          # [B, N, H]
    f_r_t = jnp.swapaxes(f[:, :, H:], 1, 2)    # [B, H, N]  (transposed once, upstream)

    # ---- Stage 2: masked softmax + aggregation over row tiles ----
    attn = functools.partial(gat_attn_kernel, num_heads=H, c_per_head=C,
                             alpha=float(alpha))
    out = pl.pallas_call(
        attn,
        out_shape=jax.ShapeDtypeStruct((B, N, HC), jnp.float32),
        grid_spec=pltpu.PrefetchScalarGridSpec(
            num_scalar_prefetch=0,
            grid=(B, n_tiles),
            in_specs=[
                pl.BlockSpec((1, tile_n, H), lambda b, r: (b, r, 0)),   # f_l rows
                pl.BlockSpec((1, H, N), lambda b, r: (b, 0, 0)),        # f_r^T (all nodes)
                pl.BlockSpec((1, tile_n, N), lambda b, r: (b, r, 0)),   # adj rows (int8)
                pl.BlockSpec((1, N, HC), lambda b, r: (b, 0, 0)),       # h (values)
            ],
            out_specs=pl.BlockSpec((1, tile_n, HC), lambda b, r: (b, r, 0))),
        compiler_params=cparams,
    )(f_l, f_r_t, adj_mask, h_nodes)

    if concat_heads:
        return out
    # Head-mean done in the wrapper so the kernel writeback stays lane-dense (HC wide).
    return out.reshape(B, N, H, C).mean(axis=2)


# ----------------------------------------------------------------------------
# Pure-JAX reference (dense equivalent of the PyTorch gather/scatter path)
# ----------------------------------------------------------------------------
def gat_reference(node_feats, adj, w, bias, a, *,
                  num_heads, concat_heads=True, alpha=0.2):
    hp = jax.lax.Precision.HIGHEST
    B, N, _ = node_feats.shape
    HC = w.shape[0]
    C = HC // num_heads
    h = jnp.einsum('bni,oi->bno', node_feats, w, precision=hp) + bias
    h = h.reshape(B, N, num_heads, C)
    a_l, a_r = a[:, :C], a[:, C:]
    f_l = jnp.einsum('bnhc,hc->bnh', h, a_l, precision=hp)
    f_r = jnp.einsum('bnhc,hc->bnh', h, a_r, precision=hp)
    logits = f_l[:, :, None, :] + f_r[:, None, :, :]
    logits = jnp.where(logits >= 0, logits, alpha * logits)
    logits = jnp.where(adj[..., None] == 1, logits, -9e15)
    probs = jax.nn.softmax(logits, axis=2)
    out = jnp.einsum('bijh,bjhc->bihc', probs, h, precision=hp)
    if concat_heads:
        return out.reshape(B, N, HC)
    return out.mean(axis=2)


def xavier_uniform(key, shape, gain):
    fan_out, fan_in = shape[0], shape[1]
    bound = gain * math.sqrt(6.0 / (fan_in + fan_out))
    return jax.random.uniform(key, shape, jnp.float32, -bound, bound)


if __name__ == "__main__":
    key = jax.random.PRNGKey(0)

    # ---- Test 1: tutorial shapes (c_in=2, c_out=4, 2 heads, concat) ----
    B, N, c_in, c_out, H = 2, 4, 2, 4, 2
    C = c_out // H
    k1, k2, k3, k4, key = jax.random.split(key, 5)
    w = xavier_uniform(k1, (H * C, c_in), gain=1.414)
    b_lin = jax.random.uniform(k2, (H * C,), jnp.float32,
                               -1.0 / math.sqrt(c_in), 1.0 / math.sqrt(c_in))
    a_param = xavier_uniform(k3, (H, 2 * C), gain=1.414)
    adj_single = jnp.array([[1, 1, 0, 0],
                            [1, 1, 1, 1],
                            [0, 1, 1, 1],
                            [0, 1, 1, 1]], dtype=jnp.float32)
    adj = jnp.broadcast_to(adj_single, (B, N, N))
    x = jax.random.normal(k4, (B, N, c_in), jnp.float32)

    out = gat_layer(x, adj, w, b_lin, a_param, num_heads=H, concat_heads=True)
    out = jax.block_until_ready(out)
    ref = gat_reference(x, adj, w, b_lin, a_param, num_heads=H, concat_heads=True)
    np.testing.assert_allclose(np.asarray(out), np.asarray(ref), rtol=1e-5, atol=1e-5)

    # ---- Test 2: multi-tile grid (N=64, tile_n=32), 4 heads, mean over heads ----
    B2, N2, c_in2, c_out2, H2 = 2, 64, 8, 32, 4
    C2 = c_out2 // H2
    k1, k2, k3, k4, k5 = jax.random.split(key, 5)
    w2 = xavier_uniform(k1, (H2 * C2, c_in2), gain=1.414)
    b2 = jax.random.uniform(k2, (H2 * C2,), jnp.float32,
                            -1.0 / math.sqrt(c_in2), 1.0 / math.sqrt(c_in2))
    a2 = xavier_uniform(k3, (H2, 2 * C2), gain=1.414)
    rand = jax.random.bernoulli(k4, 0.3, (B2, N2, N2)).astype(jnp.float32)
    adj2 = jnp.maximum(rand, jnp.eye(N2, dtype=jnp.float32)[None])  # self loops
    x2 = jax.random.normal(k5, (B2, N2, c_in2), jnp.float32)

    out2 = gat_layer(x2, adj2, w2, b2, a2, num_heads=H2, concat_heads=False, tile_n=32)
    out2 = jax.block_until_ready(out2)
    ref2 = gat_reference(x2, adj2, w2, b2, a2, num_heads=H2, concat_heads=False)
    np.testing.assert_allclose(np.asarray(out2), np.asarray(ref2), rtol=1e-5, atol=1e-5)

    print("KERNEL_OK")
</pallas_src>

<mosaic_0001>
module attributes {stable_mosaic.version = 11 : i64} {
  func.func @gat_project_kernel(%arg0: i32, %arg1: i32, %arg2: memref<1x4x2xf32, #tpu.memory_space<vmem>>, %arg3: memref<2x4xf32, #tpu.memory_space<vmem>>, %arg4: memref<1x4xf32, #tpu.memory_space<vmem>>, %arg5: memref<4x4xf32, #tpu.memory_space<vmem>>, %arg6: memref<1x4x4xf32, #tpu.memory_space<vmem>>, %arg7: memref<1x4x4xf32, #tpu.memory_space<vmem>>) attributes {dimension_semantics = [#tpu.dimension_semantics<parallel>, #tpu.dimension_semantics<parallel>], iteration_bounds = array<i64: 2, 1>, scalar_prefetch = 0 : i64, scratch_operands = 0 : i64, tpu.core_type = #tpu.core_type<tc>, window_params = [{transform_indices = @transform_0, window_bounds = array<i64: 1, 4, 2>}, {pipeline_mode = #tpu.pipeline_mode<synchronous>, transform_indices = @transform_1, window_bounds = array<i64: 2, 4>}, {pipeline_mode = #tpu.pipeline_mode<synchronous>, transform_indices = @transform_2, window_bounds = array<i64: 1, 4>}, {pipeline_mode = #tpu.pipeline_mode<synchronous>, transform_indices = @transform_3, window_bounds = array<i64: 4, 4>}, {transform_indices = @transform_4, window_bounds = array<i64: 1, 4, 4>}, {transform_indices = @transform_5, window_bounds = array<i64: 1, 4, 4>}]} {
    %c0 = arith.constant 0 : index
    %c0_0 = arith.constant 0 : index
    %c0_1 = arith.constant 0 : index
    %0 = vector.load %arg2[%c0, %c0_0, %c0_1] : memref<1x4x2xf32, #tpu.memory_space<vmem>>, vector<1x4x2xf32>
    %1 = vector.shape_cast %0 : vector<1x4x2xf32> to vector<4x2xf32>
    %c0_2 = arith.constant 0 : index
    %c0_3 = arith.constant 0 : index
    %2 = vector.load %arg3[%c0_2, %c0_3] : memref<2x4xf32, #tpu.memory_space<vmem>>, vector<2x4xf32>
    %cst = arith.constant dense<0.000000e+00> : vector<4x4xf32>
    %3 = tpu.matmul %1, %2, %cst {dimension_numbers = #tpu.dot_dimension_numbers<[1], [0], [0], [1], [0, 0, 1, 1], [], []>} : vector<4x2xf32>, vector<2x4xf32>, vector<4x4xf32> -> vector<4x4xf32>
    %c0_4 = arith.constant 0 : index
    %c0_5 = arith.constant 0 : index
    %4 = vector.load %arg4[%c0_4, %c0_5] : memref<1x4xf32, #tpu.memory_space<vmem>>, vector<1x4xf32>
    %5 = vector.broadcast %4 : vector<1x4xf32> to vector<4x4xf32>
    %6 = arith.addf %3, %5 : vector<4x4xf32>
    %c0_6 = arith.constant 0 : index
    %c0_7 = arith.constant 0 : index
    %c0_8 = arith.constant 0 : index
    %7 = vector.load %arg6[%c0_6, %c0_7, %c0_8] : memref<1x4x4xf32, #tpu.memory_space<vmem>>, vector<1x4x4xf32>
    %8 = vector.shape_cast %7 : vector<1x4x4xf32> to vector<4x4xf32>
    %9 = vector.shape_cast %6 : vector<4x4xf32> to vector<1x4x4xf32>
    tpu.vector_store %arg6[%c0_6, %c0_7, %c0_8], %9 {strides = array<i32>} : memref<1x4x4xf32, #tpu.memory_space<vmem>>, vector<1x4x4xf32>,
    %c0_9 = arith.constant 0 : index
    %c0_10 = arith.constant 0 : index
    %10 = vector.load %arg5[%c0_9, %c0_10] : memref<4x4xf32, #tpu.memory_space<vmem>>, vector<4x4xf32>
    %cst_11 = arith.constant dense<0.000000e+00> : vector<4x4xf32>
    %11 = tpu.matmul %6, %10, %cst_11 {dimension_numbers = #tpu.dot_dimension_numbers<[1], [0], [0], [1], [0, 0, 1, 1], [], []>} : vector<4x4xf32>, vector<4x4xf32>, vector<4x4xf32> -> vector<4x4xf32>
    %c0_12 = arith.constant 0 : index
    %c0_13 = arith.constant 0 : index
    %c0_14 = arith.constant 0 : index
    %12 = vector.load %arg7[%c0_12, %c0_13, %c0_14] : memref<1x4x4xf32, #tpu.memory_space<vmem>>, vector<1x4x4xf32>
    %13 = vector.shape_cast %12 : vector<1x4x4xf32> to vector<4x4xf32>
    %14 = vector.shape_cast %11 : vector<4x4xf32> to vector<1x4x4xf32>
    tpu.vector_store %arg7[%c0_12, %c0_13, %c0_14], %14 {strides = array<i32>} : memref<1x4x4xf32, #tpu.memory_space<vmem>>, vector<1x4x4xf32>,
    return
  }
  func.func @transform_0(%arg0: i32, %arg1: i32) -> (i32, i32, i32) {
    %c0_i32 = arith.constant 0 : i32
    %c0_i32_0 = arith.constant 0 : i32
    return %arg0, %arg1, %c0_i32 : i32, i32, i32
  }
  func.func @transform_1(%arg0: i32, %arg1: i32) -> (i32, i32) {
    %c0_i32 = arith.constant 0 : i32
    %c0_i32_0 = arith.constant 0 : i32
    %c0_i32_1 = arith.constant 0 : i32
    return %c0_i32, %c0_i32_0 : i32, i32
  }
  func.func @transform_2(%arg0: i32, %arg1: i32) -> (i32, i32) {
    %c0_i32 = arith.constant 0 : i32
    %c0_i32_0 = arith.constant 0 : i32
    %c0_i32_1 = arith.constant 0 : i32
    return %c0_i32, %c0_i32_0 : i32, i32
  }
  func.func @transform_3(%arg0: i32, %arg1: i32) -> (i32, i32) {
    %c0_i32 = arith.constant 0 : i32
    %c0_i32_0 = arith.constant 0 : i32
    %c0_i32_1 = arith.constant 0 : i32
    return %c0_i32, %c0_i32_0 : i32, i32
  }
  func.func @transform_4(%arg0: i32, %arg1: i32) -> (i32, i32, i32) {
    %c0_i32 = arith.constant 0 : i32
    %c0_i32_0 = arith.constant 0 : i32
    return %arg0, %arg1, %c0_i32 : i32, i32, i32
  }
  func.func @transform_5(%arg0: i32, %arg1: i32) -> (i32, i32, i32) {
    %c0_i32 = arith.constant 0 : i32
    %c0_i32_0 = arith.constant 0 : i32
    return %arg0, %arg1, %c0_i32 : i32, i32, i32
  }
}

</mosaic_0001>

<bundles_post_ra>
// kernel: tpu_custom_call.1
= control target key start
LH: loop header
LB: loop body
LE: loop exit
PB: predicated region body
PF: predicated region fallthrough
CT: control target
= control target key end

     0   :  { %11 = vsyncpa [#allocation3], 0  ;;  %s952_s0 = inlined_call_operand.vmem [shape: f32[2,4,2], index: 0, kind: input, shape index: {}]   ;;  %s953_s1 = inlined_call_operand.vmem [shape: f32[2,4], index: 1, kind: input, shape index: {}]   ;;  %s954_s2 = inlined_call_operand.vmem [shape: f32[1,4], index: 2, kind: input, shape index: {}]   ;;  %s955_s3 = inlined_call_operand.vmem [shape: f32[4,4], index: 3, kind: input, shape index: {}]   ;;  %s956_s4 = inlined_call_operand.hbm [shape: f32[2,4,4], index: 4, kind: output, shape index: {0}]   ;;  %s957_s5 = inlined_call_operand.hbm [shape: f32[2,4,4], index: 5, kind: output, shape index: {1}]  }
   0x1   :  { %13 = vsyncpa [#allocation3 + $0x1], 0 }
   0x2   :  { %14 = vsyncpa [#allocation5], 0 }
   0x3   :  { %16 = vsyncpa [#allocation5 + $0x1], 0  ;;  %s802_s18 = smov 0   ;;  %s804_s19 = smov 0  }
   0x4   :  { %s806_s20 = smov 0   ;;  %s808_s21 = smov 0  }
   0x5   :  { %s810_s22 = smov 0   ;;  %s812_s23 = smov 0  }
   0x6 LB: > { %s565_s24 = sadd.s32 4294967295, %s766_s23   ;;  %s566_s25 = sadd.s32 4294967294, %s766_s23   ;;  %s766_s23 = sphi %s812_s23, %s22_s23   ;;  %s762_s22 = sphi %s810_s22, %s966_s22   ;;  %s758_s21 = sphi %s808_s21, %s965_s21   ;;  %s754_s20 = sphi %s806_s20, %s964_s20   ;;  %s750_s19 = sphi %s804_s19, %s963_s19   ;;  %s746_s18 = sphi %s802_s18, %s962_s18  }
   0x7   : > { %s34_s26 = sadd.s32 1, %s762_s22  ;;  %s134_s27 = sadd.s32 1, %s754_s20 }
   0x8   : > { %p36_p0 = scmp.ge.s32.totalorder %s34_s26, 2  ;;  %p144_p1 = scmp.ne.s32.totalorder %s754_s20, %s750_s19 }
   0x9   : > { %p145_p2 = scmp.eq.s32.totalorder %s565_s24, 1  ;;  %p150_p3 = scmp.ne.s32.totalorder %s750_s19, %s746_s18 }
   0xa   : > { %s968_s26 = smov (%p36_p0, %s34_s26), 0  ;;  %p151_p5 = scmp.eq.s32.totalorder %s566_s25, 1 }
   0xb   : > { %p842_p4 = por %p145_p2, %p144_p1  ;;  %s129_s29 = ssub.s32 %s762_s22, %s968_s26 }
   0xc   : > { %p569_p6 = scmp.ge.s32.totalorder %s766_s23, 1  ;;  %p132_p7 = scmp.eq.s32.totalorder %s129_s29, 0 }
   0xd   : > { %p849_p8 = por %p151_p5, %p150_p3  ;;  %p216_p9 = scmp.lt.s32.totalorder %s766_s23, 3 }
   0xe   : > { %s855_s6 = scalar_select %p132_p7, %s754_s20, %s134_s27  }
   0xf   : > { %p217_p10 = pnand %p569_p6, %p216_p9 }
  0x10   : > { %p251_p11 = scmp.lt.s32.totalorder (!%p217_p10), %s758_s21, 1  ;;  %s869_s16 = sand.u32 (!%p217_p10), 1, %s750_s19  }
  0x11   : > { %220 = sbr.rel (%p217_p10) target bundleno = 429 (0x1ad), region = 36  ;;  %s570_s17 = sshll.u32 (!%p217_p10), %s869_s16, 2 }
  0x12   : > { %s243_s27 = scalar_lea.vmem (!%p217_p10), [#allocation2], %s570_s17  ;;  %s958_s29 = sshll.u32 (!%p217_p10), %s758_s21, 6 }
  0x13   : > { %s447_s7 = sshll.u32 (!%p217_p10), %s243_s27, 4  ;;  %s428_s11 = scalar_lea.sflag (!%p217_p10), [#allocation3], %s869_s16  ;;  %s448_s7 = int_to_ptr.vmem [resolvable:$true] %s447_s7 }
  0x14   : > { %s660_s12 = scalar_lea.vmem (!%p217_p10), %s448_s7, 64 }
  0x15   : > { %p661_p12 = scmp.ne.s32.totalorder (!%p217_p10), %s448_s7, %s660_s12 }
  0x16   : > { %v259_v0 = vld [vmem:[%s953_s1] sm:$0x3]  ;;  %vm271_vm0 = vcmask 1041408   ;;  %v768_v1 = vmov 0.0   ;;  %vm769_vm1 = vmmov 0   ;;  %s252_s9 = scalar_select %p251_p11, %s758_s21, 1 }
  0x17   : > { %588 = vmatprep.subr.mxu0 %v768_v1  ;;  %590 = vmatprep.mubr.msk.f32.mxu0 %vm769_vm1, %v768_v1  ;;  %vm267_vm2 = vcmask 15360   ;;  %v347_v3 = vld [vmem:[%s955_s3] sm:$0xf]  ;;  %vm352_vm3 = vcmask 1043456   ;;  %vm348_vm4 = vcmask 31744   ;;  %vm345_vm5 = vcmask 27648   ;;  %p662_p13 = pnand %p661_p12, %p842_p4 }
  0x18   : > { %589 = vmatpush3.msk.msra.mxu0 %vm271_vm0, %v259_v0  ;;  %593 = vmatprep.subr.mxu1 %v768_v1  ;;  %s572_s10 = sshll.u32 %s252_s9, 2  ;;  %v573_v4 = vld [vmem:[%s954_s2] ss:$0 sm:$0xff] }
  0x19   : > { %595 = vmatprep.mubr.msk.f32.mxu1 %vm769_vm1, %v768_v1  ;;  %s257_s13 = scalar_lea.vmem %s952_s0, %s572_s10  ;;  %594 = vmatpush3.msk.msra.mxu1 %vm352_vm3, %v347_v3  ;;  %s445_s10 = scalar_lea.hbm %s956_s4, %s958_s29 }
  0x1a   : > { %v258_v2 = vld [vmem:[%s257_s13] sm:$0xf]  ;;  %p663_p0 = pneg %p662_p13  ;;  %s770_s13 = smov [#allocation2]  }
  0x1b   : > { %591 = vmatmul.mubr.msk.f32.vlgmr.msra.gmra.mxu0 %vm267_vm2, %v258_v2  ;;  %s664_s14 = sshll.u32 %s770_s13, 4  ;;  %s665_s14 = int_to_ptr.vmem [resolvable:$false] %s664_s14 }
  0x1c   : > { %s666_s15 = scalar_lea.vmem %s665_s14, 128  ;;  %p667_p1 = scmp.lt.s32.totalorder %s448_s7, %s665_s14 }
  0x1d   : > { %p668_p2 = scmp.lt.s32.totalorder %s666_s15, %s660_s12 }
  0x1f   : > { %p669_p3 = por %p668_p2, %p667_p1 }
  0x21   : > { %p670_p5 = pnand %p669_p3, %p663_p0 }
  0xdb   : > { %v341_v5 = vpop.f32.mrf.mxu0 }
  0xdc   : > { %v342_v6 = vadd.f32 %v573_v4, %v341_v5 }
  0xdd   : > { %v592_v7 = vpop.f32.mrf.mxu0 }
  0xde   : > { %596 = vmatmul.mubr.msk.f32.vlgmr.msra.gmra.mxu1 %vm348_vm4, %v342_v6  ;;  %346 = vst.msk [vmem:[%s243_s27] sm:$0xf] %vm345_vm5, %v342_v6 }
  0xdf   : > { %673 = shalt.err (!%p670_p5)
}
  0xe0   : > { %s674_s24 = scalar_lea.hbm %s445_s10, 64  ;;  %s678_s8 = scalar_lea.hbm %s956_s4, 128 }
  0xe1   : > { %p675_p6 = scmp.ne.s32.totalorder %s445_s10, %s674_s24  ;;  %p679_p10 = scmp.lt.s32.totalorder %s445_s10, %s956_s4 }
  0xe2   : > { %p680_p11 = scmp.lt.s32.totalorder %s678_s8, %s674_s24 }
  0xe3   : > { %p676_p7 = pnand %p675_p6, %p842_p4 }
  0xe4   : > { %p681_p12 = por %p680_p11, %p679_p10 }
  0xe5   : > { %p677_p9 = pneg %p676_p7 }
  0xe7   : > { %p682_p13 = pnand %p681_p12, %p677_p9 }
  0xe9   : > { %685 = shalt.err (!%p682_p13)
}
  0xea   : > { %598 = dma.vmem_to_hbm [thread:$0]  (%p842_p4), %s448_s7, 64, %s445_s10, %s428_s11  }
  0xeb   : > { %s250_s12 = scalar_lea.vmem [#allocation4], %s570_s17  ;;  %s961_s14 = sshll.u32 %s758_s21, 6 }
  0xec   : > { %s461_s13 = sshll.u32 %s250_s12, 4  ;;  %s904_s29 = scalar_lea.hbm %s957_s5, %s961_s14  ;;  %s906_s13 = int_to_ptr.vmem [resolvable:$true] %s461_s13 }
  0xed   : > { %s433_s24 = scalar_lea.sflag [#allocation5], %s869_s16  ;;  %s686_s7 = scalar_lea.vmem %s906_s13, 64 }
  0xee   : > { %p687_p0 = scmp.ne.s32.totalorder %s906_s13, %s686_s7  ;;  %s771_s21 = smov [#allocation4]  }
  0xef   : > { %s690_s17 = sshll.u32 %s771_s21, 4  ;;  %s691_s17 = int_to_ptr.vmem [resolvable:$false] %s690_s17 }
  0xf0   : > { %p688_p1 = pnand %p687_p0, %p842_p4  ;;  %s692_s10 = scalar_lea.vmem %s691_s17, 128 }
  0xf1   : > { %p693_p3 = scmp.lt.s32.totalorder %s906_s13, %s691_s17  ;;  %p694_p5 = scmp.lt.s32.totalorder %s692_s10, %s686_s7 }
  0xf2   : > { %p689_p2 = pneg %p688_p1 }
  0xf3   : > { %p695_p6 = por %p694_p5, %p693_p3 }
  0xf5   : > { %p696_p7 = pnand %p695_p6, %p689_p2 }
 0x19e   : > { %v422_v8 = vpop.f32.mrf.mxu1 }
 0x19f   : > { %426 = vst.msk [vmem:[%s250_s12] sm:$0xf] %vm345_vm5, %v422_v8 }
 0x1a0   : > { %v597_v9 = vpop.f32.mrf.mxu1 }
 0x1a1   : > { %699 = shalt.err (!%p696_p7)
}
 0x1a2   : > { %s700_s11 = scalar_lea.hbm %s904_s29, 64  ;;  %s704_s8 = scalar_lea.hbm %s957_s5, 128 }
 0x1a3   : > { %p701_p9 = scmp.ne.s32.totalorder %s904_s29, %s700_s11  ;;  %p705_p12 = scmp.lt.s32.totalorder %s904_s29, %s957_s5 }
 0x1a4   : > { %p706_p13 = scmp.lt.s32.totalorder %s704_s8, %s700_s11 }
 0x1a5   : > { %p702_p10 = pnand %p701_p9, %p842_p4 }
 0x1a6   : > { %p707_p0 = por %p706_p13, %p705_p12 }
 0x1a7   : > { %p703_p11 = pneg %p702_p10 }
 0x1a9   : > { %p708_p1 = pnand %p707_p0, %p703_p11 }
 0x1ab   : > { %711 = shalt.err (!%p708_p1)
}
 0x1ac   : > { %599 = dma.vmem_to_hbm [thread:$0]  (%p842_p4), %s906_s13, 64, %s904_s29, %s433_s24  }
 0x1ad PF: > { %p609_p2 = scmp.ge.s32.totalorder %s766_s23, 2  ;;  %s473_s14 = sand.u32 1, %s746_s18  }
 0x1ae   : > { %s474_s15 = scalar_lea.sflag [#allocation3], %s473_s14 }
 0x1af   : > { %p603_p3 = pnand %p609_p2, %p849_p8 }
 0x1b1   : > { %p604_p5 = pneg %p603_p3 }
 0x1b3   : > { %737 = dma.done.wait (%p604_p5), %s474_s15, 64  }
 0x1b4   : > { %739 = vsyncadd (%p604_p5), %s474_s15, 4294967232  ;;  %s483_s25 = scalar_lea.sflag [#allocation5], %s473_s14 }
 0x1b5   : > { %741 = dma.done.wait (%p604_p5), %s483_s25, 64  }
 0x1b6   : > { %743 = vsyncadd (%p604_p5), %s483_s25, 4294967232  ;;  %s22_s23 = sadd.s32 1, %s766_s23   ;;  %s962_s18 = smov %s750_s19 }
 0x1b7   : > { %p19_p6 = scmp.ge.s32.totalorder %s22_s23, 4   ;;  %s963_s19 = smov %s754_s20 }
 0x1b8   : > { %s964_s20 = smov %s855_s6  ;;  %s965_s21 = smov %s762_s22 }
 0x1b9   : > { %s966_s22 = smov %s968_s26  ;;  %21 = sbr.rel (!%p19_p6) target bundleno = 6 (0x6), region = 88 }
 0x1be   :  { %488 = vsyncpa [#allocation3], 1 }
 0x1bf   :  { %490 = vsyncpa [#allocation3 + $0x1], 1 }
 0x1c0   :  { %491 = vsyncpa [#allocation5], 1 }
 0x1c1   :  { %493 = vsyncpa [#allocation5 + $0x1], 1 }

</bundles_post_ra>
